<compile_context>
chip_gen: v6e
topology: v6e:2x2x1
jax: 0.10.0
libtpu: 0.0.40
codegen_flags: <defaults>
</compile_context>

<pallas_src>
import jax
import jax.numpy as jnp
from jax.experimental import pallas as pl
from jax.experimental.pallas import tpu as pltpu

BN_EPS = 1e-5


def _round_up(x, m):
    return ((x + m - 1) // m) * m


# ---------------------------------------------------------------------------
# Kernels
# ---------------------------------------------------------------------------
def dense_kernel(x_ref, w_ref, p_ref, o_ref):
    """Full-K kernel: one MXU matmul per tile + fused bias/ReLU/BN epilogue."""
    # x_ref: (TB, K)  w_ref: (K, TN)  p_ref: (8, TN)  o_ref: (TB, TN)
    y = jnp.dot(x_ref[...], w_ref[...], preferred_element_type=jnp.float32)
    p = p_ref[...]
    # Linear bias + ReLU, then BatchNorm1d (eval) folded into scale/shift.
    y = jnp.maximum(y + p[0:1, :], 0.0) * p[1:2, :] + p[2:3, :]
    # Dropout (eval) = identity.
    o_ref[...] = y.astype(o_ref.dtype)


def dense_kernel_ktiled(x_ref, w_ref, p_ref, o_ref, acc_ref):
    """K-tiled kernel: f32 accumulator across the (arbitrary) last grid axis."""
    k = pl.program_id(2)

    @pl.when(k == 0)
    def _():
        acc_ref[...] = jnp.zeros_like(acc_ref)

    acc_ref[...] += jnp.dot(x_ref[...], w_ref[...],
                            preferred_element_type=jnp.float32)

    @pl.when(k == pl.num_programs(2) - 1)
    def _():
        p = p_ref[...]
        y = jnp.maximum(acc_ref[...] + p[0:1, :], 0.0) * p[1:2, :] + p[2:3, :]
        o_ref[...] = y.astype(o_ref.dtype)


# ---------------------------------------------------------------------------
# Wrapper
# ---------------------------------------------------------------------------
def dense_forward(x, w, b, gamma, beta, running_mean, running_var,
                  *, tile_b=None, tile_n=None, tile_k=None):
    """Eval-mode Dense forward. x: (B, IN); w: (OUT, IN) PyTorch layout."""
    B, IN = x.shape
    OUT = w.shape[0]
    out_dtype = x.dtype

    # ---- one-time wrapper work (amortized over all grid steps) -------------
    # Fold BN running stats + affine into scale/shift (f32).
    scale = gamma.astype(jnp.float32) * jax.lax.rsqrt(
        running_var.astype(jnp.float32) + BN_EPS)
    shift = beta.astype(jnp.float32) - running_mean.astype(jnp.float32) * scale
    bias = b.astype(jnp.float32)
    # (Folding scale into W/bias is only valid when scale >= 0 elementwise
    #  because ReLU sits between the matmul and the scale — keep 3-op epilogue.)

    # Pad OUT to a multiple of 128: lane-dense stores + full MXU result width.
    OUT_pad = _round_up(OUT, 128)
    pad_n = OUT_pad - OUT

    # Pre-transpose the weight once: (OUT, IN) -> (IN, OUT_pad).
    wt = jnp.transpose(w)
    if pad_n:
        wt = jnp.pad(wt, ((0, 0), (0, pad_n)))
        bias = jnp.pad(bias, (0, pad_n))
        scale = jnp.pad(scale, (0, pad_n))
        shift = jnp.pad(shift, (0, pad_n))
    params = jnp.zeros((8, OUT_pad), jnp.float32)
    params = params.at[0].set(bias).at[1].set(scale).at[2].set(shift)

    isz = x.dtype.itemsize
    wsz = wt.dtype.itemsize
    osz = jnp.dtype(out_dtype).itemsize

    # ---- VMEM budget: query the chip, ~70% of capacity as usable budget ----
    try:
        vmem_cap = int(getattr(pltpu.get_tpu_info(), "vmem_capacity_bytes",
                               64 << 20))
    except Exception:
        vmem_cap = 64 << 20                    # v7x-safe fallback
    budget = (vmem_cap * 7) // 10

    def vmem_need(tb, tn, tk, nkk):
        byt = (2 * tb * tk * isz               # x tile   (double-buffered)
               + 2 * tk * tn * wsz             # W tile   (double-buffered)
               + 2 * tb * tn * osz             # out tile (double-buffered)
               + 2 * 8 * tn * 4)               # packed params
        if nkk > 1:
            byt += tb * tn * 4                 # f32 accumulator scratch
        return byt

    # ---- N tiling: keep W fully resident (1-D grid) whenever it is small ---
    if tile_n is None:
        tile_n = OUT_pad if IN * OUT_pad * wsz <= (4 << 20) else min(OUT_pad, 512)
    tile_n = min(tile_n, OUT_pad)
    if tile_n != OUT_pad:
        tile_n = max(128, (tile_n // 128) * 128)
    nn = pl.cdiv(OUT_pad, tile_n)

    # ---- K tiling: only when the full-K slabs cannot fit the VMEM budget ---
    if tile_k is None:
        tile_k = IN
        if vmem_need(min(B, 256), tile_n, IN, 1) > budget:
            tile_k = 512 if IN >= 512 else 128
    else:
        tile_k = min(tile_k, IN)
        if tile_k != IN:
            tile_k = max(128, (tile_k // 128) * 128)
    IN_pad = _round_up(IN, tile_k) if tile_k != IN else IN
    nk = pl.cdiv(IN_pad, tile_k)
    if IN_pad != IN:
        x = jnp.pad(x, ((0, 0), (0, IN_pad - IN)))
        wt = jnp.pad(wt, ((0, IN_pad - IN), (0, 0)))

    # ---- B tiling: biggest batch tile that fits the budget; >=2 steps when -
    # ---- the grid would otherwise be a single parallel step (dual-TC v7x) --
    if tile_b is None:
        cap = B
        if nn < 2 and B >= 16:
            cap = min(B, _round_up(pl.cdiv(B, 2), 8))
        tile_b = max(1, min(8, B))
        for cand in (1024, 512, 256, 128, 64, 32, 16, 8):
            tb = min(cand, cap)
            if tb < B:
                tb = max(8, (tb // 8) * 8)
            if vmem_need(tb, tile_n, tile_k, nk) <= budget:
                tile_b = tb
                break
    else:
        tile_b = B if tile_b >= B else max(8, (tile_b // 8) * 8)
    nb = pl.cdiv(B, tile_b)

    # ---- compiler VMEM limit: actual need + 25% headroom (no 2x overcount) -
    need = vmem_need(tile_b, tile_n, tile_k, nk)
    vmem_limit = int(min(max(need + need // 4, 16 << 20), (vmem_cap * 9) // 10))

    # ---- grid / specs -------------------------------------------------------
    if nk == 1:
        kernel = dense_kernel
        scratch = []
        if nn == 1:
            grid = (nb,)
            in_specs = [
                pl.BlockSpec((tile_b, IN_pad), lambda i: (i, 0)),
                pl.BlockSpec((IN_pad, tile_n), lambda i: (0, 0)),   # resident
                pl.BlockSpec((8, tile_n), lambda i: (0, 0)),        # resident
            ]
            out_specs = pl.BlockSpec((tile_b, tile_n), lambda i: (i, 0))
            dims = ("parallel",)
        else:
            grid = (nb, nn)
            in_specs = [
                pl.BlockSpec((tile_b, IN_pad), lambda i, j: (i, 0)),
                pl.BlockSpec((IN_pad, tile_n), lambda i, j: (0, j)),
                pl.BlockSpec((8, tile_n), lambda i, j: (0, j)),
            ]
            out_specs = pl.BlockSpec((tile_b, tile_n), lambda i, j: (i, j))
            dims = ("parallel", "parallel")
    else:
        kernel = dense_kernel_ktiled
        scratch = [pltpu.VMEM((tile_b, tile_n), jnp.float32)]
        grid = (nb, nn, nk)
        in_specs = [
            pl.BlockSpec((tile_b, tile_k), lambda i, j, k: (i, k)),
            pl.BlockSpec((tile_k, tile_n), lambda i, j, k: (k, j)),
            pl.BlockSpec((8, tile_n), lambda i, j, k: (0, j)),
        ]
        out_specs = pl.BlockSpec((tile_b, tile_n), lambda i, j, k: (i, j))
        dims = ("parallel", "parallel", "arbitrary")

    out = pl.pallas_call(
        kernel,
        out_shape=jax.ShapeDtypeStruct((B, OUT_pad), out_dtype),
        grid_spec=pltpu.PrefetchScalarGridSpec(
            num_scalar_prefetch=0,
            grid=grid,
            in_specs=in_specs,
            out_specs=out_specs,
            scratch_shapes=scratch,
        ),
        compiler_params=pltpu.CompilerParams(
            dimension_semantics=dims,
            vmem_limit_bytes=vmem_limit,
        ),
    )(x, wt, params)

    return out[:, :OUT] if pad_n else out


# ---------------------------------------------------------------------------
# Reference + tests
# ---------------------------------------------------------------------------
def reference_forward(x, w, b, gamma, beta, running_mean, running_var):
    y = x @ w.T + b
    y = jnp.maximum(y, 0.0)
    y = (y - running_mean) * jax.lax.rsqrt(running_var + BN_EPS) * gamma + beta
    return y  # dropout is identity in eval


def _make_params(key, in_f, out_f):
    kw, kb, kg, kbe, km, kv = jax.random.split(key, 6)
    bound = 1.0 / (in_f ** 0.5)
    w = jax.random.uniform(kw, (out_f, in_f), minval=-bound, maxval=bound,
                           dtype=jnp.float32)
    b = jax.random.uniform(kb, (out_f,), minval=-bound, maxval=bound,
                           dtype=jnp.float32)
    gamma = jax.random.uniform(kg, (out_f,), minval=0.5, maxval=1.5,
                               dtype=jnp.float32)
    beta = jax.random.normal(kbe, (out_f,), dtype=jnp.float32) * 0.1
    running_mean = jax.random.normal(km, (out_f,), dtype=jnp.float32) * 0.1
    running_var = jax.random.uniform(kv, (out_f,), minval=0.5, maxval=2.0,
                                     dtype=jnp.float32)
    return w, b, gamma, beta, running_mean, running_var


def _check(out, ref, name):
    assert out.shape == ref.shape, f"{name}: shape {out.shape} vs {ref.shape}"
    assert jnp.allclose(out, ref, atol=1e-4, rtol=1e-4), f"{name}: mismatch"


if __name__ == "__main__":
    key = jax.random.PRNGKey(0)
    k1, k2, k3, k4, kp1, kp2, kp3 = jax.random.split(key, 7)

    # 1) TinyVGG-like Dense(32 -> 64): 1-D grid, OUT padded 64 -> 128.
    B, IN, OUT = 8, 32, 64
    x = jax.random.normal(k1, (B, IN), dtype=jnp.float32)
    p = _make_params(kp1, IN, OUT)
    out = jax.block_until_ready(dense_forward(x, *p))
    _check(out, reference_forward(x, *p), "case1")

    # 2) multi-step batch grid with partial tail block (1-D grid, resident W).
    B2 = 40
    x2 = jax.random.normal(k2, (B2, IN), dtype=jnp.float32)
    out2 = jax.block_until_ready(dense_forward(x2, *p, tile_b=16))
    _check(out2, reference_forward(x2, *p), "case2")

    # 3) 2-D grid (batch x OUT tiles), no K tiling.
    IN3, OUT3 = 32, 256
    x3 = jax.random.normal(k3, (B2, IN3), dtype=jnp.float32)
    p3 = _make_params(kp2, IN3, OUT3)
    out3 = jax.block_until_ready(dense_forward(x3, *p3, tile_b=16, tile_n=128))
    _check(out3, reference_forward(x3, *p3), "case3")

    # 4) 3-D grid with K accumulation; OUT padded 192 -> 256 and sliced off.
    B4, IN4, OUT4 = 32, 256, 192
    x4 = jax.random.normal(k4, (B4, IN4), dtype=jnp.float32)
    p4 = _make_params(kp3, IN4, OUT4)
    out4 = jax.block_until_ready(
        dense_forward(x4, *p4, tile_b=16, tile_n=128, tile_k=128))
    _check(out4, reference_forward(x4, *p4), "case4")

    print("KERNEL_OK")
</pallas_src>

<mosaic_0001>
module attributes {stable_mosaic.version = 11 : i64} {
  func.func @dense_kernel(%arg0: i32, %arg1: memref<8x32xf32, #tpu.memory_space<vmem>>, %arg2: memref<32x128xf32, #tpu.memory_space<vmem>>, %arg3: memref<8x128xf32, #tpu.memory_space<vmem>>, %arg4: memref<8x128xf32, #tpu.memory_space<vmem>>) attributes {dimension_semantics = [#tpu.dimension_semantics<parallel>], iteration_bounds = array<i64: 1>, scalar_prefetch = 0 : i64, scratch_operands = 0 : i64, tpu.core_type = #tpu.core_type<tc>, window_params = [{transform_indices = @transform_0, window_bounds = array<i64: 8, 32>}, {pipeline_mode = #tpu.pipeline_mode<synchronous>, transform_indices = @transform_1, window_bounds = array<i64: 32, 128>}, {pipeline_mode = #tpu.pipeline_mode<synchronous>, transform_indices = @transform_2, window_bounds = array<i64: 8, 128>}, {transform_indices = @transform_3, window_bounds = array<i64: 8, 128>}]} {
    %c0 = arith.constant 0 : index
    %c0_0 = arith.constant 0 : index
    %0 = vector.load %arg1[%c0, %c0_0] : memref<8x32xf32, #tpu.memory_space<vmem>>, vector<8x32xf32>
    %c0_1 = arith.constant 0 : index
    %c0_2 = arith.constant 0 : index
    %1 = vector.load %arg2[%c0_1, %c0_2] : memref<32x128xf32, #tpu.memory_space<vmem>>, vector<32x128xf32>
    %cst = arith.constant dense<0.000000e+00> : vector<8x128xf32>
    %2 = tpu.matmul %0, %1, %cst {dimension_numbers = #tpu.dot_dimension_numbers<[1], [0], [0], [1], [0, 0, 1, 1], [], []>} : vector<8x32xf32>, vector<32x128xf32>, vector<8x128xf32> -> vector<8x128xf32>
    %c0_3 = arith.constant 0 : index
    %c0_4 = arith.constant 0 : index
    %3 = vector.load %arg3[%c0_3, %c0_4] : memref<8x128xf32, #tpu.memory_space<vmem>>, vector<8x128xf32>
    %4 = vector.extract_strided_slice %3 {offsets = [0, 0], sizes = [1, 128], strides = [1, 1]} : vector<8x128xf32> to vector<1x128xf32>
    %5 = vector.broadcast %4 : vector<1x128xf32> to vector<8x128xf32>
    %6 = arith.addf %2, %5 : vector<8x128xf32>
    %cst_5 = arith.constant 0.000000e+00 : f32
    %7 = vector.broadcast %cst_5 : f32 to vector<8x128xf32>
    %8 = arith.maximumf %6, %7 : vector<8x128xf32>
    %9 = vector.extract_strided_slice %3 {offsets = [1, 0], sizes = [1, 128], strides = [1, 1]} : vector<8x128xf32> to vector<1x128xf32>
    %10 = vector.broadcast %9 : vector<1x128xf32> to vector<8x128xf32>
    %11 = arith.mulf %8, %10 : vector<8x128xf32>
    %12 = vector.extract_strided_slice %3 {offsets = [2, 0], sizes = [1, 128], strides = [1, 1]} : vector<8x128xf32> to vector<1x128xf32>
    %13 = vector.broadcast %12 : vector<1x128xf32> to vector<8x128xf32>
    %14 = arith.addf %11, %13 : vector<8x128xf32>
    %c0_6 = arith.constant 0 : index
    %c0_7 = arith.constant 0 : index
    %15 = vector.load %arg4[%c0_6, %c0_7] : memref<8x128xf32, #tpu.memory_space<vmem>>, vector<8x128xf32>
    tpu.vector_store %arg4[%c0_6, %c0_7], %14 {strides = array<i32>} : memref<8x128xf32, #tpu.memory_space<vmem>>, vector<8x128xf32>,
    return
  }
  func.func @transform_0(%arg0: i32) -> (i32, i32) {
    %c0_i32 = arith.constant 0 : i32
    %c0_i32_0 = arith.constant 0 : i32
    return %arg0, %c0_i32 : i32, i32
  }
  func.func @transform_1(%arg0: i32) -> (i32, i32) {
    %c0_i32 = arith.constant 0 : i32
    %c0_i32_0 = arith.constant 0 : i32
    %c0_i32_1 = arith.constant 0 : i32
    return %c0_i32, %c0_i32_0 : i32, i32
  }
  func.func @transform_2(%arg0: i32) -> (i32, i32) {
    %c0_i32 = arith.constant 0 : i32
    %c0_i32_0 = arith.constant 0 : i32
    %c0_i32_1 = arith.constant 0 : i32
    return %c0_i32, %c0_i32_0 : i32, i32
  }
  func.func @transform_3(%arg0: i32) -> (i32, i32) {
    %c0_i32 = arith.constant 0 : i32
    %c0_i32_0 = arith.constant 0 : i32
    return %arg0, %c0_i32 : i32, i32
  }
}

</mosaic_0001>

<bundles_post_ra>
// kernel: tpu_custom_call.1
= control target key start
LH: loop header
LB: loop body
LE: loop exit
PB: predicated region body
PF: predicated region fallthrough
CT: control target
= control target key end

     0   :  { %8 = vsyncpa [#allocation3], 0  ;;  %s315_s0 = inlined_call_operand.hbm [shape: f32[8,32], index: 0, kind: input, shape index: {}]   ;;  %s316_s1 = inlined_call_operand.hbm [shape: f32[32,128], index: 1, kind: input, shape index: {}]   ;;  %s317_s2 = inlined_call_operand.hbm [shape: f32[8,128], index: 2, kind: input, shape index: {}]   ;;  %s318_s3 = inlined_call_operand.hbm [shape: f32[8,128], index: 3, kind: output, shape index: {}]  }
   0x1   :  { %9 = vsyncpa [#allocation6], 0 }
   0x2   :  { %10 = vsyncpa [#allocation4], 0  ;;  %s275_s12 = smov [#allocation5]  }
   0x3   :  { %s26_s13 = sshll.u32 %s275_s12, 4  ;;  %s27_s13 = int_to_ptr.vmem [resolvable:$true] %s26_s13 }
   0x4   :  { %s197_s14 = scalar_lea.vmem %s27_s13, 512  ;;  %p202_p1 = scmp.lt.s32.totalorder %s27_s13, %s27_s13 }
   0x5   :  { %p198_p0 = scmp.ne.s32.totalorder %s27_s13, %s197_s14  ;;  %p203_p2 = scmp.lt.s32.totalorder %s197_s14, %s197_s14 }
   0x7   :  { %p204_p3 = por %p203_p2, %p202_p1 }
   0x9   :  { %p205_p4 = pnand %p204_p3, %p198_p0 }
   0xb   :  { %208 = shalt.err (!%p205_p4)
}
   0xc   :  { %s276_s15 = smov 128   ;;  %s277_s16 = smov 8  }
   0xd   :  { %32 = dma.hbm_to_vmem [thread:$0]  %s316_s1, 512, %s27_s13, [#allocation6], %s276_s15, %s276_s15, %s277_s16  }
   0xe   :  { %s278_s19 = smov [#allocation2]   ;;  %s279_s21 = smov [#allocation7]  }
   0xf   :  { %s17_s20 = sshll.u32 %s278_s19, 4  ;;  %s39_s22 = sshll.u32 %s279_s21, 4  ;;  %s18_s20 = int_to_ptr.vmem [resolvable:$true] %s17_s20  ;;  %s40_s22 = int_to_ptr.vmem [resolvable:$true] %s39_s22 }
  0x10   :  { %s217_s23 = scalar_lea.vmem %s18_s20, 128  ;;  %p222_p6 = scmp.lt.s32.totalorder %s18_s20, %s18_s20 }
  0x11   :  { %p218_p5 = scmp.ne.s32.totalorder %s18_s20, %s217_s23  ;;  %p223_p7 = scmp.lt.s32.totalorder %s217_s23, %s217_s23 }
  0x13   :  { %p224_p8 = por %p223_p7, %p222_p6 }
  0x15   :  { %p225_p9 = pnand %p224_p8, %p218_p5 }
  0x17   :  { %228 = shalt.err (!%p225_p9)
}
  0x18   :  { %20 = dma.hbm_to_vmem [thread:$0]  %s315_s0, 128, %s18_s20, [#allocation3]  }
  0x19   :  { %s237_s26 = scalar_lea.vmem %s40_s22, 128  ;;  %p242_p11 = scmp.lt.s32.totalorder %s40_s22, %s40_s22 }
  0x1a   :  { %p238_p10 = scmp.ne.s32.totalorder %s40_s22, %s237_s26  ;;  %p243_p12 = scmp.lt.s32.totalorder %s237_s26, %s237_s26 }
  0x1c   :  { %p244_p13 = por %p243_p12, %p242_p11 }
  0x1e   :  { %p245_p0 = pnand %p244_p13, %p238_p10 }
  0x20   :  { %248 = shalt.err (!%p245_p0)
}
  0x21   :  { %42 = dma.hbm_to_vmem [thread:$0]  %s317_s2, 128, %s40_s22, [#allocation6]  }
  0x22   :  { %269 = dma.done.wait [#allocation3], 128  }
  0x23   :  { %270 = vsyncadd [#allocation3], 4294967168 }
  0x24   :  { %271 = dma.done.wait [#allocation6], 640  }
  0x25   :  { %272 = vsyncadd [#allocation6], 4294966656  ;;  %v280_v0 = vmov 0.0   ;;  %vm281_vm0 = vmmov 0   ;;  %v56_v1 = vld [vmem:[#allocation5 + $0x18] sm:$0xff]  ;;  %v55_v2 = vld [vmem:[#allocation5 + $0x10] sm:$0xff]  ;;  %v58_v6 = vlaneseq }
  0x26   :  { %170 = vmatprep.subr.mxu0 %v280_v0  ;;  %178 = vmatprep.mubr.msk.f32.mxu0 %vm281_vm0, %v280_v0  ;;  %v54_v3 = vld [vmem:[#allocation5 + $0x8] sm:$0xff]  ;;  %v53_v4 = vld [vmem:[#allocation5] sm:$0xff]  ;;  %v52_v5 = vld [vmem:[#allocation2] sm:$0xff]  ;;  %vm62_vm1 = vcmask 261120   ;;  %s282_s0 = smov [#allocation8]  }
  0x27   :  { %171 = vmatpush3.msra.mxu0 %v56_v1  ;;  %v59_v7 = vshrl.u32 %v58_v6, 7  ;;  %v57_v9 = vld [vmem:[#allocation7] sm:$0xff]  ;;  %s154_s2 = sshll.u32 %s282_s0, 4  ;;  %s155_s2 = int_to_ptr.vmem [resolvable:$true] %s154_s2 }
  0x28   :  { %172 = vmatprep.subr.mxu0 %v280_v0  ;;  %s249_s28 = scalar_lea.vmem %s155_s2, 128  ;;  %p254_p2 = scmp.lt.s32.totalorder %s155_s2, %s155_s2 }
  0x29   :  { %173 = vmatpush3.msra.mxu0 %v55_v2  ;;  %v60_v8 = vsub.s32 0, %v59_v7  ;;  %v139_v11 = vsub.s32 1, %v59_v7  ;;  %v144_v12 = vsub.s32 2, %v59_v7  ;;  %p250_p1 = scmp.ne.s32.totalorder %s155_s2, %s249_s28  ;;  %p255_p3 = scmp.lt.s32.totalorder %s249_s28, %s249_s28 }
  0x2a   :  { %174 = vmatprep.subr.mxu0 %v280_v0 }
  0x2b   :  { %175 = vmatpush3.msra.mxu0 %v54_v3  ;;  %v61_v10 = vrot.slane %v57_v9, %v60_v8  ;;  %v140_v15 = vrot.slane %v57_v9, %v139_v11  ;;  %v145_v18 = vrot.slane %v57_v9, %v144_v12  ;;  %p256_p4 = por %p255_p3, %p254_p2 }
  0x2c   :  { %176 = vmatprep.subr.mxu0 %v280_v0 }
  0x2d   :  { %177 = vmatpush3.msra.mxu0 %v53_v4  ;;  %p257_p5 = pnand %p256_p4, %p250_p1 }
  0x2e   :  { %179 = vmatmul.mubr.msk.f32.vlgmr.msra.gmra.mxu0 %vm62_vm1, %v52_v5 }
  0xee   :  { %v132_v13 = vpop.f32.mrf.mxu0 }
  0xef   :  { %v133_v14 = vadd.f32 %v132_v13, %v61_v10 }
  0xf0   :  { %v180_v16 = vpop.f32.mrf.mxu0 }
  0xf1   :  { %v136_v17 = vmax.f32 %v133_v14, 0.0 }
  0xf3   :  { %v141_v19 = vmul.f32 %v140_v15, %v136_v17 }
  0xf5   :  { %v146_v20 = vadd.f32 %v145_v18, %v141_v19 }
  0xf7   :  { %147 = vst [vmem:[#allocation8] sm:$0xff] %v146_v20 }
  0xf8   :  { %260 = shalt.err (!%p257_p5)
}
  0xf9   :  { %157 = dma.vmem_to_hbm [thread:$0]  %s155_s2, 128, %s318_s3, [#allocation4]  }
  0xfa   :  { %273 = dma.done.wait [#allocation4], 128  }
  0xfb   :  { %274 = vsyncadd [#allocation4], 4294967168 }
  0xfc   :  { %161 = vsyncpa [#allocation3], 1 }
  0xfd   :  { %162 = vsyncpa [#allocation6], 1 }
  0xfe   :  { %163 = vsyncpa [#allocation4], 1 }

</bundles_post_ra>
